<compile_context>
chip_gen: v7x
topology: tpu7x:2x2x1
jax: 0.10.0
libtpu: 0.0.40
codegen_flags: <defaults>
</compile_context>

<pallas_src>
import functools

import jax
import jax.numpy as jnp
from jax.experimental import pallas as pl
from jax.experimental.pallas import tpu as pltpu


def _round_up(n: int, m: int) -> int:
    return ((n + m - 1) // m) * m


def _kmn_head_kernel(x_ref, w1_ref, b1_ref, w2_ref, b2_ref, w3_ref, b3_ref,
                     out_ref):
    # x_ref : (tb, in_dim)  input dtype (streamed over the batch grid)
    # w1    : (in_dim, H1)  f32   (layer 1 kept f32 for accuracy)
    # w2    : (H1, H2)      bf16   w3: (H2, k_pad) bf16
    # biases: (1, H)        f32   (b3 padded with -1e30 in the padded columns)
    x = x_ref[...].astype(jnp.float32)

    h1 = jnp.dot(x, w1_ref[...], preferred_element_type=jnp.float32)
    h1 = jnp.maximum(h1 + b1_ref[...], 0.0)                     # f32 VPU math

    h2 = jnp.dot(h1.astype(jnp.bfloat16), w2_ref[...],
                 preferred_element_type=jnp.float32)
    h2 = jnp.maximum(h2 + b2_ref[...], 0.0)

    logits = jnp.dot(h2.astype(jnp.bfloat16), w3_ref[...],
                     preferred_element_type=jnp.float32)
    logits = logits + b3_ref[...]                               # (tb, k_pad)

    # Numerically stable softmax; padded columns carry a -1e30 f32 bias so
    # exp underflows to exactly 0 there.  Exact divide (cheap: this kernel is
    # HBM-bound) so every row sums to 1 to float precision.
    m = jnp.max(logits, axis=-1, keepdims=True)
    e = jnp.exp(logits - m)
    s = jnp.sum(e, axis=-1, keepdims=True)
    out_ref[...] = (e / s).astype(out_ref.dtype)


def prepare_kmn_head_params(w1, b1, w2, b2, w3, b3):
    """One-time pad / cast of the head parameters for the Pallas kernel.

    Call at parameter-setup time (not per forward) so no pad/cast HBM passes
    run on the hot path.  Weight layout is (fan_in, fan_out), bias (1, fan_out)
    -- i.e. the nn.Linear weights transposed.
    """
    n_centres = w3.shape[1]
    k_pad = _round_up(n_centres, 128)        # lane-dense logits / output
    w1_p = jnp.asarray(w1, jnp.float32)      # layer 1 stays f32
    b1_p = jnp.asarray(b1, jnp.float32)
    w2_p = jnp.asarray(w2, jnp.bfloat16)     # layers 2/3: bf16 MXU operands
    b2_p = jnp.asarray(b2, jnp.float32)
    w3_p = jnp.pad(jnp.asarray(w3, jnp.float32),
                   ((0, 0), (0, k_pad - n_centres))).astype(jnp.bfloat16)
    # NOTE: b3_p must stay f32 so the -1e30 padded-column bias underflows exp
    # to exactly 0 (a bf16 cast would give -inf: still correct but fragile).
    b3_p = jnp.pad(jnp.asarray(b3, jnp.float32),
                   ((0, 0), (0, k_pad - n_centres)), constant_values=-1e30)
    return (w1_p, b1_p, w2_p, b2_p, w3_p, b3_p)


@functools.partial(jax.jit, static_argnames=("n_centres", "block_b"))
def kmn_head_forward(x, params, log_sigma, *, n_centres, block_b=2048):
    """Returns (weights[B, n_centres], scale[]) matching _KMNHead.forward."""
    w1, b1, w2, b2, w3, b3 = params
    B, in_dim = x.shape
    H1 = w1.shape[1]
    H2 = w2.shape[1]
    k_pad = w3.shape[1]

    # Batch tile: big enough to amortize the ~0.35 us per-grid-step overhead,
    # small enough that double-buffered x/out tiles plus the (tb, k_pad) f32
    # temporaries stay inside scoped VMEM on all generations (v5e 16 MiB
    # default -> raised below; v7x 64 MiB physical), and split into >= 2 steps
    # for large B so v7x's two TensorCores both get work.
    if B <= 512:
        tb = B                                           # one full-extent tile
    else:
        tb = min(block_b, _round_up((B + 1) // 2, 8))
    grid = (pl.cdiv(B, tb),)                             # partial tail OK

    weights = pl.pallas_call(
        _kmn_head_kernel,
        out_shape=jax.ShapeDtypeStruct((B, k_pad), x.dtype),
        grid=grid,
        in_specs=[
            # x streamed over the batch grid, un-padded / un-cast.
            pl.BlockSpec((tb, in_dim), lambda i: (i, 0)),
            # Weights / biases: constant block index -> DMA'd once, VMEM-resident.
            pl.BlockSpec((in_dim, H1), lambda i: (0, 0)),
            pl.BlockSpec((1, H1), lambda i: (0, 0)),
            pl.BlockSpec((H1, H2), lambda i: (0, 0)),
            pl.BlockSpec((1, H2), lambda i: (0, 0)),
            pl.BlockSpec((H2, k_pad), lambda i: (0, 0)),
            pl.BlockSpec((1, k_pad), lambda i: (0, 0)),
        ],
        out_specs=pl.BlockSpec((tb, k_pad), lambda i: (i, 0)),
        compiler_params=pltpu.CompilerParams(
            # v7x can shard the batch axis across its 2 TensorCores; neutral
            # on v5e/v6e.  (Switch to pltpu.CORE_PARALLEL if xprof ever shows
            # one v7x core idle.)
            dimension_semantics=("parallel",),
            vmem_limit_bytes=32 * 1024 * 1024,
        ),
    )(x, w1, b1, w2, b2, w3, b3)

    if k_pad != n_centres:
        weights = weights[:, :n_centres]     # drop padded (exactly-0) columns
    scale = jnp.exp(log_sigma)               # scalar glue, fused into this jit
    return weights, scale


def _kmn_head_reference(x, w1, b1, w2, b2, w3, b3, log_sigma):
    """Pure-JAX f32 reference matching the PyTorch module."""
    h1 = jnp.maximum(x @ w1 + b1, 0.0)
    h2 = jnp.maximum(h1 @ w2 + b2, 0.0)
    logits = h2 @ w3 + b3
    return jax.nn.softmax(logits, axis=-1), jnp.exp(log_sigma)


def _init_params(key, in_dim, hidden, n_centres, log_sigma_init=-0.5,
                 dtype=jnp.float32):
    """Deterministic synthetic parameter init (shapes match nn.Linear layers)."""
    dims = [in_dim] + list(hidden) + [n_centres]
    params = []
    for fi, fo in zip(dims[:-1], dims[1:]):
        key, kw, kb = jax.random.split(key, 3)
        limit = 1.0 / jnp.sqrt(float(fi))
        w = jax.random.uniform(kw, (fi, fo), dtype, -limit, limit)
        b = jax.random.uniform(kb, (1, fo), dtype, -limit, limit)
        params += [w, b]
    log_sigma = jnp.asarray(log_sigma_init, dtype)
    return params, log_sigma


if __name__ == "__main__":
    key = jax.random.PRNGKey(0)

    # Small, module-consistent shapes: batch=8, in_dim=32, hidden=(128, 128),
    # n_centres=64 (K = centres.numel()).
    B, in_dim = 8, 32
    hidden = (128, 128)
    n_centres = 64

    key, kx = jax.random.split(key)
    x = jax.random.normal(kx, (B, in_dim), jnp.float32)

    (w1, b1, w2, b2, w3, b3), log_sigma = _init_params(
        key, in_dim, hidden, n_centres)

    # One-time parameter preparation (pad/cast kept off the per-call hot path).
    prepped = prepare_kmn_head_params(w1, b1, w2, b2, w3, b3)
    prepped = jax.block_until_ready(prepped)

    weights, scale = kmn_head_forward(x, prepped, log_sigma,
                                      n_centres=n_centres)
    jax.block_until_ready((weights, scale))

    # Reference check (layers 2/3 use bf16 MXU operands => loose tolerance).
    ref_w, ref_s = _kmn_head_reference(x, w1, b1, w2, b2, w3, b3, log_sigma)

    assert weights.shape == (B, n_centres)
    assert weights.dtype == x.dtype
    # Exact softmax divide in f32 -> rows sum to 1 to float precision.
    assert jnp.allclose(jnp.sum(weights, axis=-1), 1.0, atol=1e-4)
    assert jnp.allclose(weights, ref_w, atol=3e-2)
    assert jnp.allclose(scale, ref_s, atol=1e-6)

    print("KERNEL_OK")
</pallas_src>

<mosaic_0001>
module attributes {stable_mosaic.version = 11 : i64} {
  func.func @_kmn_head_kernel(%arg0: i32, %arg1: memref<8x32xf32, #tpu.memory_space<vmem>>, %arg2: memref<32x128xf32, #tpu.memory_space<vmem>>, %arg3: memref<1x128xf32, #tpu.memory_space<vmem>>, %arg4: memref<128x128xbf16, #tpu.memory_space<vmem>>, %arg5: memref<1x128xf32, #tpu.memory_space<vmem>>, %arg6: memref<128x128xbf16, #tpu.memory_space<vmem>>, %arg7: memref<1x128xf32, #tpu.memory_space<vmem>>, %arg8: memref<8x128xf32, #tpu.memory_space<vmem>>) attributes {dimension_semantics = [#tpu.dimension_semantics<parallel>], iteration_bounds = array<i64: 1>, scalar_prefetch = 0 : i64, scratch_operands = 0 : i64, tpu.core_type = #tpu.core_type<tc>, window_params = [{transform_indices = @transform_0, window_bounds = array<i64: 8, 32>}, {pipeline_mode = #tpu.pipeline_mode<synchronous>, transform_indices = @transform_1, window_bounds = array<i64: 32, 128>}, {pipeline_mode = #tpu.pipeline_mode<synchronous>, transform_indices = @transform_2, window_bounds = array<i64: 1, 128>}, {pipeline_mode = #tpu.pipeline_mode<synchronous>, transform_indices = @transform_3, window_bounds = array<i64: 128, 128>}, {pipeline_mode = #tpu.pipeline_mode<synchronous>, transform_indices = @transform_4, window_bounds = array<i64: 1, 128>}, {pipeline_mode = #tpu.pipeline_mode<synchronous>, transform_indices = @transform_5, window_bounds = array<i64: 128, 128>}, {pipeline_mode = #tpu.pipeline_mode<synchronous>, transform_indices = @transform_6, window_bounds = array<i64: 1, 128>}, {transform_indices = @transform_7, window_bounds = array<i64: 8, 128>}]} {
    %c0 = arith.constant 0 : index
    %c0_0 = arith.constant 0 : index
    %0 = vector.load %arg1[%c0, %c0_0] : memref<8x32xf32, #tpu.memory_space<vmem>>, vector<8x32xf32>
    %c0_1 = arith.constant 0 : index
    %c0_2 = arith.constant 0 : index
    %1 = vector.load %arg2[%c0_1, %c0_2] : memref<32x128xf32, #tpu.memory_space<vmem>>, vector<32x128xf32>
    %cst = arith.constant dense<0.000000e+00> : vector<8x128xf32>
    %2 = tpu.matmul %0, %1, %cst {dimension_numbers = #tpu.dot_dimension_numbers<[1], [0], [0], [1], [0, 0, 1, 1], [], []>} : vector<8x32xf32>, vector<32x128xf32>, vector<8x128xf32> -> vector<8x128xf32>
    %c0_3 = arith.constant 0 : index
    %c0_4 = arith.constant 0 : index
    %3 = vector.load %arg3[%c0_3, %c0_4] : memref<1x128xf32, #tpu.memory_space<vmem>>, vector<1x128xf32>
    %4 = vector.broadcast %3 : vector<1x128xf32> to vector<8x128xf32>
    %5 = arith.addf %2, %4 : vector<8x128xf32>
    %cst_5 = arith.constant 0.000000e+00 : f32
    %6 = vector.broadcast %cst_5 : f32 to vector<8x128xf32>
    %7 = arith.maximumf %5, %6 : vector<8x128xf32>
    %8 = arith.truncf %7 : vector<8x128xf32> to vector<8x128xbf16>
    %c0_6 = arith.constant 0 : index
    %c0_7 = arith.constant 0 : index
    %9 = vector.load %arg4[%c0_6, %c0_7] : memref<128x128xbf16, #tpu.memory_space<vmem>>, vector<128x128xbf16>
    %cst_8 = arith.constant dense<0.000000e+00> : vector<8x128xf32>
    %10 = tpu.matmul %8, %9, %cst_8 {dimension_numbers = #tpu.dot_dimension_numbers<[1], [0], [0], [1], [0, 0, 1, 1], [], []>} : vector<8x128xbf16>, vector<128x128xbf16>, vector<8x128xf32> -> vector<8x128xf32>
    %c0_9 = arith.constant 0 : index
    %c0_10 = arith.constant 0 : index
    %11 = vector.load %arg5[%c0_9, %c0_10] : memref<1x128xf32, #tpu.memory_space<vmem>>, vector<1x128xf32>
    %12 = vector.broadcast %11 : vector<1x128xf32> to vector<8x128xf32>
    %13 = arith.addf %10, %12 : vector<8x128xf32>
    %cst_11 = arith.constant 0.000000e+00 : f32
    %14 = vector.broadcast %cst_11 : f32 to vector<8x128xf32>
    %15 = arith.maximumf %13, %14 : vector<8x128xf32>
    %16 = arith.truncf %15 : vector<8x128xf32> to vector<8x128xbf16>
    %c0_12 = arith.constant 0 : index
    %c0_13 = arith.constant 0 : index
    %17 = vector.load %arg6[%c0_12, %c0_13] : memref<128x128xbf16, #tpu.memory_space<vmem>>, vector<128x128xbf16>
    %cst_14 = arith.constant dense<0.000000e+00> : vector<8x128xf32>
    %18 = tpu.matmul %16, %17, %cst_14 {dimension_numbers = #tpu.dot_dimension_numbers<[1], [0], [0], [1], [0, 0, 1, 1], [], []>} : vector<8x128xbf16>, vector<128x128xbf16>, vector<8x128xf32> -> vector<8x128xf32>
    %c0_15 = arith.constant 0 : index
    %c0_16 = arith.constant 0 : index
    %19 = vector.load %arg7[%c0_15, %c0_16] : memref<1x128xf32, #tpu.memory_space<vmem>>, vector<1x128xf32>
    %20 = vector.broadcast %19 : vector<1x128xf32> to vector<8x128xf32>
    %21 = arith.addf %18, %20 : vector<8x128xf32>
    %cst_17 = arith.constant dense<0xFF800000> : vector<8xf32>
    %22 = vector.multi_reduction <maximumf>, %21, %cst_17 [1] : vector<8x128xf32> to vector<8xf32>
    %23 = vector.shape_cast %22 : vector<8xf32> to vector<8x1xf32>
    %24 = vector.broadcast %23 : vector<8x1xf32> to vector<8x128xf32>
    %25 = arith.subf %21, %24 : vector<8x128xf32>
    %26 = math.exp %25 : vector<8x128xf32>
    %cst_18 = arith.constant dense<0.000000e+00> : vector<8xf32>
    %27 = vector.multi_reduction <add>, %26, %cst_18 [1] : vector<8x128xf32> to vector<8xf32>
    %28 = vector.shape_cast %27 : vector<8xf32> to vector<8x1xf32>
    %29 = vector.broadcast %28 : vector<8x1xf32> to vector<8x128xf32>
    %30 = arith.divf %26, %29 : vector<8x128xf32>
    %c0_19 = arith.constant 0 : index
    %c0_20 = arith.constant 0 : index
    %31 = vector.load %arg8[%c0_19, %c0_20] : memref<8x128xf32, #tpu.memory_space<vmem>>, vector<8x128xf32>
    tpu.vector_store %arg8[%c0_19, %c0_20], %30 {strides = array<i32>} : memref<8x128xf32, #tpu.memory_space<vmem>>, vector<8x128xf32>,
    return
  }
  func.func @transform_0(%arg0: i32) -> (i32, i32) {
    %c0_i32 = arith.constant 0 : i32
    %c0_i32_0 = arith.constant 0 : i32
    return %arg0, %c0_i32 : i32, i32
  }
  func.func @transform_1(%arg0: i32) -> (i32, i32) {
    %c0_i32 = arith.constant 0 : i32
    %c0_i32_0 = arith.constant 0 : i32
    %c0_i32_1 = arith.constant 0 : i32
    return %c0_i32, %c0_i32_0 : i32, i32
  }
  func.func @transform_2(%arg0: i32) -> (i32, i32) {
    %c0_i32 = arith.constant 0 : i32
    %c0_i32_0 = arith.constant 0 : i32
    %c0_i32_1 = arith.constant 0 : i32
    return %c0_i32, %c0_i32_0 : i32, i32
  }
  func.func @transform_3(%arg0: i32) -> (i32, i32) {
    %c0_i32 = arith.constant 0 : i32
    %c0_i32_0 = arith.constant 0 : i32
    %c0_i32_1 = arith.constant 0 : i32
    return %c0_i32, %c0_i32_0 : i32, i32
  }
  func.func @transform_4(%arg0: i32) -> (i32, i32) {
    %c0_i32 = arith.constant 0 : i32
    %c0_i32_0 = arith.constant 0 : i32
    %c0_i32_1 = arith.constant 0 : i32
    return %c0_i32, %c0_i32_0 : i32, i32
  }
  func.func @transform_5(%arg0: i32) -> (i32, i32) {
    %c0_i32 = arith.constant 0 : i32
    %c0_i32_0 = arith.constant 0 : i32
    %c0_i32_1 = arith.constant 0 : i32
    return %c0_i32, %c0_i32_0 : i32, i32
  }
  func.func @transform_6(%arg0: i32) -> (i32, i32) {
    %c0_i32 = arith.constant 0 : i32
    %c0_i32_0 = arith.constant 0 : i32
    %c0_i32_1 = arith.constant 0 : i32
    return %c0_i32, %c0_i32_0 : i32, i32
  }
  func.func @transform_7(%arg0: i32) -> (i32, i32) {
    %c0_i32 = arith.constant 0 : i32
    %c0_i32_0 = arith.constant 0 : i32
    return %arg0, %c0_i32 : i32, i32
  }
}

</mosaic_0001>

<bundles_post_ra>
// kernel: kmn_head_forward.1
= control target key start
LH: loop header
LB: loop body
LE: loop exit
PB: predicated region body
PF: predicated region fallthrough
CT: control target
= control target key end

     0   :  { %12 = vsyncpa [#allocation3], 0  ;;  %s813_s0 = inlined_call_operand.hbm [shape: f32[8,32], index: 0, kind: input, shape index: {}]   ;;  %s814_s1 = inlined_call_operand.hbm [shape: f32[32,128], index: 1, kind: input, shape index: {}]   ;;  %s815_s2 = inlined_call_operand.vmem [shape: f32[1,128], index: 2, kind: input, shape index: {}]   ;;  %s816_s3 = inlined_call_operand.hbm [shape: bf16[128,128], index: 3, kind: input, shape index: {}]   ;;  %s817_s4 = inlined_call_operand.vmem [shape: f32[1,128], index: 4, kind: input, shape index: {}]   ;;  %s818_s5 = inlined_call_operand.hbm [shape: bf16[128,128], index: 5, kind: input, shape index: {}]   ;;  %s819_s6 = inlined_call_operand.vmem [shape: f32[1,128], index: 6, kind: input, shape index: {}]   ;;  %s820_s7 = inlined_call_operand.hbm [shape: f32[8,128], index: 7, kind: output, shape index: {}]  }
   0x1   :  { %13 = vsyncpa [#allocation6], 0 }
   0x2   :  { %14 = vsyncpa [#allocation9], 0 }
   0x3   :  { %15 = vsyncpa [#allocation4], 0  ;;  %s670_s24 = smov [#allocation5]   ;;  %s552_s28 = scalar_lea.hbm %s814_s1, 512 }
   0x4   :  { %s31_s25 = sshll.u32 %s670_s24, 4  ;;  %p553_p0 = scmp.ne.s32.totalorder %s814_s1, %s552_s28  ;;  %s32_s25 = int_to_ptr.vmem [resolvable:$true] %s31_s25 }
   0x5   :  { %p556_p1 = scmp.lt.u32.totalorder %s552_s28, %s814_s1 }
   0x7   :  { %p558_p2 = pnand %p556_p1, %p553_p0 }
   0x9   :  { %561 = shalt.err (!%p558_p2)
}
   0xa   :  { %s562_s10 = scalar_lea.vmem %s32_s25, 512  ;;  %p567_p4 = scmp.lt.s32.totalorder %s32_s25, %s32_s25 }
   0xb   :  { %p563_p3 = scmp.ne.s32.totalorder %s32_s25, %s562_s10  ;;  %p568_p5 = scmp.lt.s32.totalorder %s562_s10, %s562_s10 }
   0xd   :  { %p569_p6 = por %p568_p5, %p567_p4 }
   0xf   :  { %p570_p7 = pnand %p569_p6, %p563_p3 }
  0x11   :  { %573 = shalt.err (!%p570_p7)
}
  0x12   :  { %s671_s11 = smov 128   ;;  %s672_s12 = smov 8  }
  0x13   :  { %37 = dma.hbm_to_vmem [thread:$0]  %s814_s1, 512, %s32_s25, [#allocation6], %s671_s11, %s671_s11, %s672_s12  }
  0x14   :  { %s673_s15 = smov [#allocation2]   ;;  %s674_s17 = smov [#allocation7]  }
  0x15   :  { %s22_s16 = sshll.u32 %s673_s15, 4  ;;  %s45_s18 = sshll.u32 %s674_s17, 4  ;;  %s23_s16 = int_to_ptr.vmem [resolvable:$true] %s22_s16  ;;  %s46_s18 = int_to_ptr.vmem [resolvable:$true] %s45_s18 }
  0x16   :  { %s574_s21 = scalar_lea.hbm %s813_s0, 128 }
  0x17   :  { %p575_p8 = scmp.ne.s32.totalorder %s813_s0, %s574_s21  ;;  %p578_p9 = scmp.lt.u32.totalorder %s574_s21, %s813_s0 }
  0x19   :  { %p580_p10 = pnand %p578_p9, %p575_p8 }
  0x1b   :  { %583 = shalt.err (!%p580_p10)
}
  0x1c   :  { %s584_s1 = scalar_lea.vmem %s23_s16, 128  ;;  %p589_p12 = scmp.lt.s32.totalorder %s23_s16, %s23_s16 }
  0x1d   :  { %p585_p11 = scmp.ne.s32.totalorder %s23_s16, %s584_s1  ;;  %p590_p13 = scmp.lt.s32.totalorder %s584_s1, %s584_s1 }
  0x1f   :  { %p591_p0 = por %p590_p13, %p589_p12 }
  0x21   :  { %p592_p1 = pnand %p591_p0, %p585_p11 }
  0x23   :  { %595 = shalt.err (!%p592_p1)
}
  0x24   :  { %25 = dma.hbm_to_vmem [thread:$0]  %s813_s0, 128, %s23_s16, [#allocation3]  }
  0x25   :  { %s596_s30 = scalar_lea.hbm %s816_s3, 1024 }
  0x26   :  { %p597_p2 = scmp.ne.s32.totalorder %s816_s3, %s596_s30  ;;  %p600_p3 = scmp.lt.u32.totalorder %s596_s30, %s816_s3 }
  0x28   :  { %p602_p4 = pnand %p600_p3, %p597_p2 }
  0x2a   :  { %605 = shalt.err (!%p602_p4)
}
  0x2b   :  { %s606_s12 = scalar_lea.vmem %s46_s18, 1024  ;;  %p611_p6 = scmp.lt.s32.totalorder %s46_s18, %s46_s18 }
  0x2c   :  { %p607_p5 = scmp.ne.s32.totalorder %s46_s18, %s606_s12  ;;  %p612_p7 = scmp.lt.s32.totalorder %s606_s12, %s606_s12 }
  0x2e   :  { %p613_p8 = por %p612_p7, %p611_p6 }
  0x30   :  { %p614_p9 = pnand %p613_p8, %p607_p5 }
  0x32   :  { %617 = shalt.err (!%p614_p9)
}
  0x33   :  { %s675_s0 = smov 64   ;;  %s676_s13 = smov 4  }
  0x34   :  { %51 = dma.hbm_to_vmem [thread:$0]  %s816_s3, 1024, %s46_s18, [#allocation6], %s675_s0, %s675_s0, %s676_s13  }
  0x35   :  { %s677_s16 = smov [#allocation8]   ;;  %s618_s21 = scalar_lea.hbm %s818_s5, 1024 }
  0x36   :  { %s59_s17 = sshll.u32 %s677_s16, 4  ;;  %p619_p10 = scmp.ne.s32.totalorder %s818_s5, %s618_s21  ;;  %s60_s17 = int_to_ptr.vmem [resolvable:$true] %s59_s17 }
  0x37   :  { %p622_p11 = scmp.lt.u32.totalorder %s618_s21, %s818_s5 }
  0x39   :  { %p624_p12 = pnand %p622_p11, %p619_p10 }
  0x3b   :  { %627 = shalt.err (!%p624_p12)
}
  0x3c   :  { %s628_s1 = scalar_lea.vmem %s60_s17, 1024  ;;  %p633_p0 = scmp.lt.s32.totalorder %s60_s17, %s60_s17 }
  0x3d   :  { %p629_p13 = scmp.ne.s32.totalorder %s60_s17, %s628_s1  ;;  %p634_p1 = scmp.lt.s32.totalorder %s628_s1, %s628_s1 }
  0x3f   :  { %p635_p2 = por %p634_p1, %p633_p0 }
  0x41   :  { %p636_p3 = pnand %p635_p2, %p629_p13 }
  0x43   :  { %639 = shalt.err (!%p636_p3)
}
  0x44   :  { %65 = dma.hbm_to_vmem [thread:$0]  %s818_s5, 1024, %s60_s17, [#allocation9], %s675_s0, %s675_s0, %s676_s13  }
  0x45   :  { %662 = dma.done.wait [#allocation3], 128  }
  0x46   :  { %663 = vsyncadd [#allocation3], 4294967168 }
  0x47   :  { %664 = dma.done.wait [#allocation6], 1536  }
  0x48   :  { %665 = vsyncadd [#allocation6], 4294965760 }
  0x49   :  { %666 = dma.done.wait [#allocation9], 1024  }
  0x4a   :  { %667 = vsyncadd [#allocation9], 4294966272  ;;  %v678_v0 = vmov 0.0|0.0   ;;  %vm679_vm0 = vmmov 0   ;;  %v680_v1 = vmov 0.0   ;;  %v82_v2 = vld [vmem:[#allocation5] sm:$0xff] }
  0x4b   :  { %514 = vmatprep.subr.bf16.mxu0 %v678_v0  ;;  %471 = vmatprep.mubr.msk.f32.mxu0 %vm679_vm0, %v680_v1  ;;  %v83_v3 = vld [vmem:[#allocation5 + $0x8] sm:$0xff]  ;;  %v84_v4 = vld [vmem:[#allocation5 + $0x10] sm:$0xff]  ;;  %v85_v6 = vld [vmem:[#allocation5 + $0x18] sm:$0xff]  ;;  %vm93_vm1 = vcmask 261120  }
  0x4c   :  { %474 = vmatprep.subr.bf16.mxu1 %v680_v1  ;;  %490 = vmatprep.mubr.msk.bf16.mxu1 %vm679_vm0, %v680_v1  ;;  %v515_v5 = vpack.c.bf16 %v83_v3, %v82_v2  ;;  %v532_v7 = vld [vmem:[#allocation7] sm:$0xff]   ;;  %v518_v8 = vpack.c.bf16 %v85_v6, %v84_v4  ;;  %v533_v9 = vld [vmem:[#allocation7 + $0x8] sm:$0xff]   ;;  %v81_v10 = vld [vmem:[#allocation2] sm:$0xff] }
  0x4d   :  { %475 = vmatpush3.bf16.msra.mxu1 %v532_v7  ;;  %v534_v11 = vld [vmem:[#allocation7 + $0x10] sm:$0xff]   ;;  %v535_v12 = vld [vmem:[#allocation7 + $0x18] sm:$0xff]   ;;  %v536_v13 = vld [vmem:[#allocation7 + $0x20] sm:$0xff]  }
  0x4e   :  { %516 = vmatpush3.bf16.msra.mxu0 %v515_v5  ;;  %476 = vmatprep.subr.bf16.mxu1 %v680_v1  ;;  %v537_v14 = vld [vmem:[#allocation7 + $0x28] sm:$0xff]   ;;  %v538_v15 = vld [vmem:[#allocation7 + $0x30] sm:$0xff]   ;;  %v539_v16 = vld [vmem:[#allocation7 + $0x38] sm:$0xff]  }
  0x4f   :  { %517 = vmatprep.subr.bf16.mxu0 %v678_v0  ;;  %v540_v17 = vld [vmem:[#allocation8] sm:$0xff]   ;;  %v541_v18 = vld [vmem:[#allocation8 + $0x8] sm:$0xff]   ;;  %v542_v19 = vld [vmem:[#allocation8 + $0x10] sm:$0xff]  }
  0x50   :  { %v543_v20 = vld [vmem:[#allocation8 + $0x18] sm:$0xff]   ;;  %v544_v21 = vld [vmem:[#allocation8 + $0x20] sm:$0xff]   ;;  %v545_v22 = vld [vmem:[#allocation8 + $0x28] sm:$0xff]  }
  0x51   :  { %477 = vmatpush3.bf16.msra.mxu1 %v533_v9  ;;  %v420_v23 = vld [vmem:[%s815_s2] ss:$0 sm:$0xff]  ;;  %v546_v29 = vld [vmem:[#allocation8 + $0x30] sm:$0xff]  }
  0x52   :  { %519 = vmatpush3.bf16.msra.mxu0 %v518_v8  ;;  %478 = vmatprep.subr.bf16.mxu1 %v680_v1  ;;  %v547_v30 = vld [vmem:[#allocation8 + $0x38] sm:$0xff]  }
  0x53   :  { %494 = vmatprep.subr.bf16.mxu0 %v680_v1  ;;  %v422_v31 = vld [vmem:[%s817_s4] ss:$0 sm:$0xff]  ;;  %s681_s4 = smov [#allocation10]  }
  0x54   :  { %v431_v39 = vld [vmem:[%s819_s6] ss:$0 sm:$0xff]  ;;  %s409_s30 = sshll.u32 %s681_s4, 4  ;;  %s410_s30 = int_to_ptr.vmem [resolvable:$true] %s409_s30 }
  0x55   :  { %472 = vmatmul.mubr.msk.f32.vlgmr.msra.gmra.mrb[0].mxu0 %vm93_vm1, %v81_v10  ;;  %479 = vmatpush3.bf16.msra.mxu1 %v534_v11  ;;  %s640_s6 = scalar_lea.vmem %s410_s30, 128  ;;  %p645_p5 = scmp.lt.s32.totalorder %s410_s30, %s410_s30 }
  0x56   :  { %510 = vmatprep.mubr.msk.bf16.mxu0 %vm679_vm0, %v680_v1  ;;  %480 = vmatprep.subr.bf16.mxu1 %v680_v1  ;;  %p641_p4 = scmp.ne.s32.totalorder %s410_s30, %s640_s6  ;;  %p646_p6 = scmp.lt.s32.totalorder %s640_s6, %s640_s6 }
  0x57   :  { %495 = vmatpush3.bf16.msra.mxu0 %v540_v17 }
  0x58   :  { %496 = vmatprep.subr.bf16.mxu0 %v680_v1  ;;  %p647_p7 = por %p646_p6, %p645_p5 }
  0x59   :  { %481 = vmatpush3.bf16.msra.mxu1 %v535_v12 }
  0x5a   :  { %482 = vmatprep.subr.bf16.mxu1 %v680_v1  ;;  %p648_p8 = pnand %p647_p7, %p641_p4 }
  0x5b   :  { %497 = vmatpush3.bf16.msra.mxu0 %v541_v18 }
  0x5c   :  { %498 = vmatprep.subr.bf16.mxu0 %v680_v1 }
  0x5d   :  { %483 = vmatpush3.bf16.msra.mxu1 %v536_v13 }
  0x5e   :  { %484 = vmatprep.subr.bf16.mxu1 %v680_v1 }
  0x5f   :  { %499 = vmatpush3.bf16.msra.mxu0 %v542_v19 }
  0x60   :  { %500 = vmatprep.subr.bf16.mxu0 %v680_v1 }
  0x61   :  { %485 = vmatpush3.bf16.msra.mxu1 %v537_v14 }
  0x62   :  { %486 = vmatprep.subr.bf16.mxu1 %v680_v1 }
  0x63   :  { %501 = vmatpush3.bf16.msra.mxu0 %v543_v20 }
  0x64   :  { %502 = vmatprep.subr.bf16.mxu0 %v680_v1 }
  0x65   :  { %487 = vmatpush3.bf16.msra.mxu1 %v538_v15 }
  0x66   :  { %488 = vmatprep.subr.bf16.mxu1 %v680_v1 }
  0x67   :  { %503 = vmatpush3.bf16.msra.mxu0 %v544_v21 }
  0x68   :  { %504 = vmatprep.subr.bf16.mxu0 %v680_v1 }
  0x69   :  { %489 = vmatpush3.bf16.msra.mxu1 %v539_v16 }
  0x6b   :  { %505 = vmatpush3.bf16.msra.mxu0 %v545_v22 }
  0x6c   :  { %506 = vmatprep.subr.bf16.mxu0 %v680_v1 }
  0x6f   :  { %507 = vmatpush3.bf16.msra.mxu0 %v546_v29 }
  0x70   :  { %508 = vmatprep.subr.bf16.mxu0 %v680_v1 }
  0x73   :  { %509 = vmatpush3.bf16.msra.mxu0 %v547_v30 }
 0x128   :  { %v163_v24 = vpop.f32.mrb[0].mxu0 }
 0x129   :  { %v164_v25 = vadd.f32 %v420_v23, %v163_v24  ;;  %v473_v26 = vpop.f32.mrb[1].mxu0 }
 0x12b   :  { %v167_v27 = vmax.f32 %v164_v25, 0.0 }
 0x12d   :  { %v168_v28 = vpack.c.bf16 %v167_v27, %v167_v27 }
 0x12f   :  { %491 = vmatmul.mubr.bf16.vlgmr.msra.gmra.mrb[0].mxu1 %v168_v28 }
 0x202   :  { %v274_v32 = vpop.f32.mrb[0].mxu1 }
 0x203   :  { %v275_v33 = vadd.f32 %v422_v31, %v274_v32  ;;  %v492_v34 = vpop.f32.mrb[1].mxu1 }
 0x204   :  { %v277_v35 = vpop.f32.mrb[2].mxu1 }
 0x205   :  { %v280_v36 = vmax.f32 %v275_v33, 0.0  ;;  %v493_v37 = vpop.f32.mrb[3].mxu1 }
 0x207   :  { %v281_v38 = vpack.c.bf16 %v280_v36, %v280_v36 }
 0x209   :  { %511 = vmatmul.mubr.bf16.vlgmr.msra.gmra.mrb[4].mxu0 %v281_v38 }
 0x2dc   :  { %v387_v40 = vpop.f32.mrb[4].mxu0 }
 0x2dd   :  { %v388_v41 = vadd.f32 %v431_v39, %v387_v40  ;;  %v512_v42 = vpop.f32.mrb[5].mxu0 }
 0x2de   :  { %v390_v43 = vpop.f32.mrb[6].mxu0 }
 0x2df   :  { %393 = vmax.xlane.f32.xlu0 %v388_v41  ;;  %v513_v44 = vpop.f32.mrb[7].mxu0 }
 0x36c   :  { %v394_v45 = vpop.xlane.xlu0 %393 }
 0x36d   :  { %v395_v46 = vsub.f32 %v388_v41, %v394_v45 }
 0x36f   :  { %v396_v47 = vmul.f32 1.442695, %v395_v46 }
 0x371   :  { %548 = vpow2.f32 %v396_v47 }
 0x37b   :  { %v549_v48 = vpop.eup %548 }
 0x37c   :  { %398 = vadd.xlane.f32.xlu0 %v549_v48 }
 0x409   :  { %v399_v49 = vpop.xlane.xlu0 %398 }
 0x40a   :  { %550 = vrcp.f32 %v399_v49 }
 0x414   :  { %v551_v50 = vpop.eup %550 }
 0x415   :  { %v401_v51 = vmul.f32 %v551_v50, %v549_v48 }
 0x417   :  { %402 = vst [vmem:[#allocation10] sm:$0xff] %v401_v51 }
 0x418   :  { %651 = shalt.err (!%p648_p8)
}
 0x419   :  { %s652_s10 = scalar_lea.hbm %s820_s7, 128 }
 0x41a   :  { %p653_p9 = scmp.ne.s32.totalorder %s820_s7, %s652_s10  ;;  %p656_p10 = scmp.lt.u32.totalorder %s652_s10, %s820_s7 }
 0x41c   :  { %p658_p11 = pnand %p656_p10, %p653_p9 }
 0x41e   :  { %661 = shalt.err (!%p658_p11)
}
 0x41f   :  { %412 = dma.vmem_to_hbm [thread:$0]  %s410_s30, 128, %s820_s7, [#allocation4]  }
 0x420   :  { %668 = dma.done.wait [#allocation4], 128  }
 0x421   :  { %669 = vsyncadd [#allocation4], 4294967168 }
 0x422   :  { %416 = vsyncpa [#allocation3], 1 }
 0x423   :  { %417 = vsyncpa [#allocation6], 1 }
 0x424   :  { %418 = vsyncpa [#allocation9], 1 }
 0x425   :  { %419 = vsyncpa [#allocation4], 1 }

</bundles_post_ra>
